<compile_context>
chip_gen: v6e
topology: v6e:2x2x1
jax: 0.10.0
libtpu: 0.0.40
codegen_flags: <defaults>
</compile_context>

<pallas_src>
import jax
import jax.numpy as jnp
from jax.experimental import pallas as pl
from jax.experimental.pallas import tpu as pltpu


def _transpose_tile_kernel(x_ref, o_ref):
    """x_ref: (T1, T2) VMEM tile  ->  o_ref: (T2, T1) VMEM tile (XLU transpose)."""
    # TODO(synk): for bf16/int8 inputs, compare this lowering against a
    # 32-bit-container transpose (packed sub-32-bit vregs need extra XLU
    # interleave ops); f32 path below is the clean case.
    o_ref[...] = x_ref[...].T


def _pick_tile(dim: int, target: int) -> int:
    """Largest lane-aligned tile (<= target, multiple of 128) dividing `dim`.

    Falls back to the full dim when it is small or ragged (BlockSpec rule:
    block dims must be (8,128)-aligned OR equal to the full array dim).
    """
    if dim <= target:
        return dim
    t = (target // 128) * 128
    while t >= 128:
        if dim % t == 0:
            return t
        t -= 128
    return dim  # ragged dim: full extent (perf-only degradation, still correct)


def transpose_layer_forward(x, *, target_tile: int = 512):
    """TransposeLayer.forward: x.transpose(1, 2).   (N, D1, D2) -> (N, D2, D1)."""
    # TODO(synk): the PyTorch module also does a host-side debug
    # `print('x_shape before transpose: ', x.shape)`; omitted so stdout is
    # exactly "KERNEL_OK".
    assert x.ndim == 3, "TransposeLayer kernel implemented for 3-D inputs (B, D1, D2)"
    n, d1, d2 = x.shape

    # ~target_tile^2 * 4B per f32 block (<= 1 MiB at 512); with Pallas
    # double-buffering that is 2*(in+out) = ~4 MiB -> fits every generation's
    # scoped-VMEM default without touching vmem_limit_bytes.
    t1 = _pick_tile(d1, target_tile)
    t2 = _pick_tile(d2, target_tile)

    grid = (n, d1 // t1, d2 // t2)

    return pl.pallas_call(
        _transpose_tile_kernel,
        out_shape=jax.ShapeDtypeStruct((n, d2, d1), x.dtype),
        grid=grid,
        # Batch dim is size-1 and squeezed out of the kernel view; the DMA
        # engine handles the coarse (i, j) -> (j, i) tile placement via the
        # output index_map, the kernel only transposes within one tile.
        in_specs=[
            pl.BlockSpec((pl.Squeezed(), t1, t2), lambda b, i, j: (b, i, j)),
        ],
        out_specs=pl.BlockSpec((pl.Squeezed(), t2, t1), lambda b, i, j: (b, j, i)),
        compiler_params=pltpu.CompilerParams(
            # Every grid step writes a distinct output tile -> all axes are
            # independent; 'parallel' lets v7x shard steps across its 2 TCs
            # (measured-neutral on single-TC v5e/v6e).
            dimension_semantics=("parallel", "parallel", "parallel"),
        ),
    )(x)


if __name__ == "__main__":
    # Small shapes consistent with the prediction-head usage (B, seq, hidden),
    # chosen so both the input and the transposed output are lane-dense.
    # target_tile=128 here just to exercise the 2-D tiling path (grid = (2,2,2)
    # = 8 pipelined steps) even at this toy size.
    batch, seq, hidden = 2, 256, 256
    key = jax.random.PRNGKey(0)
    x = jax.random.normal(key, (batch, seq, hidden), dtype=jnp.float32)

    out = transpose_layer_forward(x, target_tile=128)
    out = jax.block_until_ready(out)

    ref = jnp.transpose(x, (0, 2, 1))          # == x.transpose(1, 2) in PyTorch
    assert out.shape == (batch, hidden, seq), out.shape
    assert jnp.array_equal(out, ref), float(jnp.max(jnp.abs(out - ref)))
    print("KERNEL_OK")
</pallas_src>

<mosaic_0001>
module attributes {stable_mosaic.version = 11 : i64} {
  func.func @_transpose_tile_kernel(%arg0: i32, %arg1: i32, %arg2: i32, %arg3: memref<1x128x128xf32, #tpu.memory_space<vmem>>, %arg4: memref<1x128x128xf32, #tpu.memory_space<vmem>>) attributes {dimension_semantics = [#tpu.dimension_semantics<parallel>, #tpu.dimension_semantics<parallel>, #tpu.dimension_semantics<parallel>], iteration_bounds = array<i64: 2, 2, 2>, scalar_prefetch = 0 : i64, scratch_operands = 0 : i64, tpu.core_type = #tpu.core_type<tc>, window_params = [{transform_indices = @transform_0, window_bounds = array<i64: 1, 128, 128>}, {transform_indices = @transform_1, window_bounds = array<i64: 1, 128, 128>}]} {
    %c0 = arith.constant 0 : index
    %c0_0 = arith.constant 0 : index
    %c0_1 = arith.constant 0 : index
    %0 = vector.load %arg3[%c0, %c0_0, %c0_1] : memref<1x128x128xf32, #tpu.memory_space<vmem>>, vector<1x128x128xf32>
    %1 = vector.shape_cast %0 : vector<1x128x128xf32> to vector<128x128xf32>
    %2 = tpu.transpose %1, [1, 0] : vector<128x128xf32> -> vector<128x128xf32>
    %c0_2 = arith.constant 0 : index
    %c0_3 = arith.constant 0 : index
    %c0_4 = arith.constant 0 : index
    %3 = vector.load %arg4[%c0_2, %c0_3, %c0_4] : memref<1x128x128xf32, #tpu.memory_space<vmem>>, vector<1x128x128xf32>
    %4 = vector.shape_cast %3 : vector<1x128x128xf32> to vector<128x128xf32>
    %5 = vector.shape_cast %2 : vector<128x128xf32> to vector<1x128x128xf32>
    tpu.vector_store %arg4[%c0_2, %c0_3, %c0_4], %5 {strides = array<i32>} : memref<1x128x128xf32, #tpu.memory_space<vmem>>, vector<1x128x128xf32>,
    return
  }
  func.func @transform_0(%arg0: i32, %arg1: i32, %arg2: i32) -> (i32, i32, i32) {
    %c0_i32 = arith.constant 0 : i32
    return %arg0, %arg1, %arg2 : i32, i32, i32
  }
  func.func @transform_1(%arg0: i32, %arg1: i32, %arg2: i32) -> (i32, i32, i32) {
    %c0_i32 = arith.constant 0 : i32
    return %arg0, %arg2, %arg1 : i32, i32, i32
  }
}

</mosaic_0001>

<bundles_post_ra>
// kernel: tpu_custom_call.1
= control target key start
LH: loop header
LB: loop body
LE: loop exit
PB: predicated region body
PF: predicated region fallthrough
CT: control target
= control target key end

     0   :  { %s945_s0 = inlined_call_operand.hbm [shape: f32[2,256,256], index: 0, kind: input, shape index: {}]   ;;  %s946_s1 = inlined_call_operand.hbm [shape: f32[2,256,256], index: 1, kind: output, shape index: {}]  }
   0x1   :  { %953 = sst [smem:[#allocation13_spill]] %s946_s1 }
   0x2   :  { %6 = vsyncpa [#allocation3], 0 }
   0x3   :  { %8 = vsyncpa [#allocation3 + $0x1], 0 }
   0x4   :  { %9 = vsyncpa [#allocation4], 0 }
   0x5   :  { %11 = vsyncpa [#allocation4 + $0x1], 0  ;;  %s677_s6 = smov 0   ;;  %s679_s7 = smov 0  }
   0x6   :  { %s681_s8 = smov 0   ;;  %s683_s9 = smov 0  }
   0x7   :  { %s685_s10 = smov 0   ;;  %s687_s11 = smov 0  }
   0x8   :  { %s689_s12 = smov 0   ;;  %s691_s13 = smov 0  }
   0x9   :  { %s693_s14 = smov 0   ;;  %s695_s15 = smov 0  }
   0xa   :  { %s697_s16 = smov 0   ;;  %s699_s17 = smov 0  }
   0xb   :  { %s701_s18 = smov 0  }
   0xc LB: > { %954 = sst [smem:[#allocation8_spill]] %s609_s6  ;;  %s348_s19 = sadd.s32 4294967295, %s657_s18   ;;  %s657_s18 = sphi %s701_s18, %s17_s18   ;;  %s653_s17 = sphi %s699_s17, %s982_s17   ;;  %s649_s16 = sphi %s697_s16, %s981_s16   ;;  %s645_s15 = sphi %s695_s15, %s980_s15   ;;  %s641_s14 = sphi %s693_s14, %s979_s14   ;;  %s637_s13 = sphi %s691_s13, %s978_s13   ;;  %s633_s12 = sphi %s689_s12, %s977_s12   ;;  %s629_s11 = sphi %s687_s11, %s976_s11   ;;  %s625_s10 = sphi %s685_s10, %s975_s10   ;;  %s621_s9 = sphi %s683_s9, %s974_s9   ;;  %s617_s8 = sphi %s681_s8, %s973_s8   ;;  %s613_s7 = sphi %s679_s7, %s972_s7   ;;  %s609_s6 = sphi %s677_s6, %s971_s6  }
   0xd   : > { %s349_s20 = sadd.s32 4294967294, %s657_s18   ;;  %s29_s21 = sadd.s32 1, %s645_s15 }
   0xe   : > { %s32_s22 = sadd.s32 1, %s649_s16  ;;  %p30_p0 = scmp.ge.s32.totalorder %s29_s21, 2 }
   0xf   : > { %s36_s23 = sadd.s32 1, %s653_s17  ;;  %s47_s24 = sadd.s32 1, %s629_s11 }
  0x10   : > { %p54_p1 = scmp.ne.s32.totalorder %s629_s11, %s625_s10  ;;  %s984_s21 = smov (%p30_p0, %s29_s21), 0 }
  0x11   : > { %955 = sst [smem:[#allocation9_spill]] %s984_s21  ;;  %s986_s22 = smov (!%p30_p0, %s32_s22), %s649_s16 }
  0x12   : > { %s43_s25 = ssub.s32 %s645_s15, %s984_s21  ;;  %p55_p2 = scmp.eq.s32.totalorder %s657_s18, 0 }
  0x13   : > { %p34_p3 = scmp.ge.s32.totalorder %s986_s22, 2  ;;  %p60_p4 = scmp.ne.s32.totalorder %s625_s10, %s621_s9 }
  0x14   : > { %p758_p5 = por %p55_p2, %p54_p1  ;;  %p61_p6 = scmp.eq.s32.totalorder %s348_s19, 0 }
  0x15   : > { %s988_s22 = smov (%p34_p3, %s986_s22), 0  ;;  %s990_s23 = smov (!%p34_p3, %s36_s23), %s653_s17 }
  0x16   : > { %957 = sst [smem:[#allocation10_spill]] %s988_s22  ;;  %s41_s27 = ssub.s32 %s649_s16, %s988_s22 }
  0x17   : > { %p767_p7 = por %p61_p6, %p60_p4  ;;  %p38_p8 = scmp.ge.s32.totalorder %s990_s23, 2 }
  0x18   : > { %s77_s29 = sadd.s32 1, %s617_s8  ;;  %p87_p9 = scmp.ne.s32.totalorder %s617_s8, %s613_s7 }
  0x19   : > { %p88_p10 = scmp.eq.s32.totalorder %s348_s19, 7  ;;  %s992_s23 = smov (%p38_p8, %s990_s23), 0 }
  0x1a   : > { %959 = sst [smem:[#allocation11_spill]] %s992_s23  ;;  %p93_p12 = scmp.ne.s32.totalorder %s613_s7, %s609_s6 }
  0x1b   : > { %p776_p11 = por %p88_p10, %p87_p9  ;;  %s40_s2 = ssub.s32 %s653_s17, %s992_s23 }
  0x1c   : > { %p94_p13 = scmp.eq.s32.totalorder %s349_s20, 7  ;;  %s42_s3 = sor.u32 %s41_s27, %s40_s2 }
  0x1d   : > { %s72_s4 = sor.u32 %s43_s25, %s40_s2  ;;  %s44_s5 = sor.u32 %s43_s25, %s42_s3 }
  0x1e   : > { %s74_s9 = sor.u32 %s72_s4, %s41_s27  ;;  %p45_p0 = scmp.eq.s32.totalorder %s44_s5, 0 }
  0x1f   : > { %p75_p1 = scmp.eq.s32.totalorder %s74_s9, 0  ;;  %p784_p2 = por %p94_p13, %p93_p12 }
  0x20   : > { %s791_s22 = scalar_select %p45_p0, %s629_s11, %s47_s24  }
  0x21   : > { %s961_s19 = scalar_select %p784_p2, 1, 0 }
  0x22   : > { %s794_s21 = scalar_select %p75_p1, %s617_s8, %s77_s29  }
  0x23   : > { %962 = sst [smem:[#allocation12_spill]] %s961_s19  ;;  %p381_p3 = scmp.lt.s32.totalorder %s657_s18, 8 }
  0x24   : > { %s114_s23 = sand.u32 1, %s629_s11   ;;  %s367_s20 = sshll.u32 %s649_s16, 5 }
  0x25   : > { %s352_s6 = sshll.u32 %s114_s23, 7  ;;  %s124_s1 = sadd.s32 %s645_s15, %s367_s20 }
  0x26   : > { %s355_s2 = sshll.u32 %s653_s17, 6  ;;  %s118_s27 = scalar_lea.vmem [#allocation2], %s352_s6 }
  0x27   : > { %s126_s25 = sadd.s32 %s355_s2, %s124_s1  ;;  %s129_s3 = sshll.u32 %s118_s27, 4  ;;  %s130_s3 = int_to_ptr.vmem [resolvable:$true] %s129_s3 }
  0x28   : > { %s356_s4 = sshll.u32 %s126_s25, 7  ;;  %p806_p4 = pnand %p381_p3, %p758_p5 }
  0x29   : > { %s128_s19 = scalar_lea.hbm %s945_s0, %s356_s4  ;;  %s115_s29 = scalar_lea.sflag [#allocation3], %s114_s23 }
  0x2a   : > { %p495_p6 = pneg %p806_p4  ;;  %s506_s20 = scalar_lea.vmem %s130_s3, 2048 }
  0x2b   : > { %p507_p8 = scmp.ne.s32.totalorder %s130_s3, %s506_s20  ;;  %s659_s1 = smov [#allocation2]  }
  0x2c   : > { %s511_s6 = sshll.u32 %s659_s1, 4  ;;  %s512_s6 = int_to_ptr.vmem [resolvable:$false] %s511_s6 }
  0x2d   : > { %p509_p9 = pnand %p507_p8, %p495_p6  ;;  %s513_s2 = scalar_lea.vmem %s512_s6, 4096 }
  0x2e   : > { %p514_p12 = scmp.lt.s32.totalorder %s130_s3, %s512_s6  ;;  %p515_p13 = scmp.lt.s32.totalorder %s513_s2, %s506_s20 }
  0x2f   : > { %p510_p10 = pneg %p509_p9 }
  0x30   : > { %p516_p0 = por %p515_p13, %p514_p12 }
  0x32   : > { %p517_p1 = pnand %p516_p0, %p510_p10 }
  0x34   : > { %520 = shalt.err (!%p517_p1)
}
  0x35   : > { %s660_s26 = smov 256   ;;  %s661_s23 = smov 128  }
  0x36   : > { %s662_s25 = smov 8   ;;  %p357_p5 = scmp.ge.s32.totalorder %s657_s18, 1 }
  0x37   : > { %376 = dma.hbm_to_vmem [thread:$0]  (!%p806_p4), %s128_s19, 2048, %s130_s3, %s115_s29, %s660_s26, %s661_s23, %s662_s25  }
  0x38   : > { %p137_p3 = scmp.lt.s32.totalorder %s657_s18, 9 }
  0x3a   : > { %p138_p6 = pnand %p357_p5, %p137_p3 }
  0x3b   : > { %s143_s27 = sand.u32 (!%p138_p6), 1, %s625_s10  }
  0x3c   : > { %141 = sbr.rel (%p138_p6) target bundleno = 267 (0x10b), region = 24  ;;  %s358_s4 = sshll.u32 (!%p138_p6), %s143_s27, 7 }
  0x3d   : > { %s144_s5 = scalar_lea.sflag (!%p138_p6), [#allocation3], %s143_s27  ;;  %s817_s9 = scalar_lea.vmem (!%p138_p6), [#allocation2], %s358_s4 }
  0x41   : > { %600 = dma.done.wait (%p767_p7), %s144_s5, 2048  }
  0x42   : > { %602 = vsyncadd (%p767_p7), %s144_s5, 4294965248  ;;  %v168_v0 = vld [vmem:[%s817_s9] sm:$0xff]  ;;  %v169_v1 = vld [vmem:[%s817_s9 + $0x8] sm:$0xff]  ;;  %s163_s28 = sand.u32 1, %s613_s7   ;;  %s368_s24 = sshll.u32 %s633_s12, 5 }
  0x43   : > { %184 = vxpose.xlu0.b32.start [1/16] %v168_v0, 128  ;;  %v170_v2 = vld [vmem:[%s817_s9 + $0x10] sm:$0xff]  ;;  %v171_v3 = vld [vmem:[%s817_s9 + $0x18] sm:$0xff]  ;;  %v172_v4 = vld [vmem:[%s817_s9 + $0x20] sm:$0xff]  ;;  %s359_s19 = sshll.u32 %s163_s28, 7  ;;  %s245_s29 = sadd.s32 %s637_s13, %s368_s24 }
  0x44   : > { %v173_v5 = vld [vmem:[%s817_s9 + $0x28] sm:$0xff]  ;;  %v174_v6 = vld [vmem:[%s817_s9 + $0x30] sm:$0xff]  ;;  %v175_v7 = vld [vmem:[%s817_s9 + $0x38] sm:$0xff]  ;;  %s842_s3 = scalar_lea.vmem [#allocation5], %s359_s19  ;;  %s363_s20 = sshll.u32 %s641_s14, 6 }
  0x45   : > { %v176_v8 = vld [vmem:[%s817_s9 + $0x40] sm:$0xff]  ;;  %v177_v9 = vld [vmem:[%s817_s9 + $0x48] sm:$0xff]  ;;  %v178_v10 = vld [vmem:[%s817_s9 + $0x50] sm:$0xff]  ;;  %s247_s1 = sadd.s32 %s363_s20, %s245_s29  ;;  %s250_s2 = sshll.u32 %s842_s3, 4  ;;  %s868_s2 = int_to_ptr.vmem [resolvable:$true] %s250_s2 }
  0x46   : > { %v179_v11 = vld [vmem:[%s817_s9 + $0x58] sm:$0xff]  ;;  %v180_v12 = vld [vmem:[%s817_s9 + $0x60] sm:$0xff]  ;;  %v181_v13 = vld [vmem:[%s817_s9 + $0x68] sm:$0xff]  ;;  %s364_s6 = sshll.u32 %s247_s1, 7  ;;  %s964_s25 = sld [smem:[#allocation13_spill]] }
  0x47   : > { %185 = vxpose.xlu0.b32.cont [2/16] %v169_v1, 128  ;;  %v182_v14 = vld [vmem:[%s817_s9 + $0x70] sm:$0xff]  ;;  %v183_v15 = vld [vmem:[%s817_s9 + $0x78] sm:$0xff]  ;;  %s873_s12 = scalar_lea.sflag [#allocation4], %s163_s28  ;;  %s521_s13 = scalar_lea.vmem %s868_s2, 2048 }
  0x48   : > { %p522_p7 = scmp.ne.s32.totalorder %s868_s2, %s521_s13  ;;  %s663_s14 = smov [#allocation5]  }
  0x49   : > { %s525_s4 = sshll.u32 %s663_s14, 4  ;;  %s526_s4 = int_to_ptr.vmem [resolvable:$false] %s525_s4 }
  0x4a   : > { %p523_p4 = pnand %p522_p7, %p776_p11  ;;  %s527_s5 = scalar_lea.vmem %s526_s4, 4096 }
  0x4b   : > { %186 = vxpose.xlu0.b32.cont [3/16] %v170_v2, 128  ;;  %p528_p9 = scmp.lt.s32.totalorder %s868_s2, %s526_s4  ;;  %p529_p10 = scmp.lt.s32.totalorder %s527_s5, %s521_s13 }
  0x4c   : > { %s866_s27 = scalar_lea.hbm %s964_s25, %s364_s6  ;;  %p524_p8 = pneg %p523_p4 }
  0x4d   : > { %p530_p12 = por %p529_p10, %p528_p9 }
  0x4f   : > { %187 = vxpose.xlu0.b32.cont [4/16] %v171_v3, 128  ;;  %p531_p13 = pnand %p530_p12, %p524_p8 }
  0x53   : > { %188 = vxpose.xlu0.b32.cont [5/16] %v172_v4, 128 }
  0x57   : > { %189 = vxpose.xlu0.b32.cont [6/16] %v173_v5, 128 }
  0x5b   : > { %190 = vxpose.xlu0.b32.cont [7/16] %v174_v6, 128 }
  0x5f   : > { %191 = vxpose.xlu0.b32.cont [8/16] %v175_v7, 128 }
  0x63   : > { %192 = vxpose.xlu0.b32.cont [9/16] %v176_v8, 128 }
  0x67   : > { %193 = vxpose.xlu0.b32.cont [10/16] %v177_v9, 128 }
  0x6b   : > { %194 = vxpose.xlu0.b32.cont [11/16] %v178_v10, 128 }
  0x6f   : > { %195 = vxpose.xlu0.b32.cont [12/16] %v179_v11, 128 }
  0x73   : > { %196 = vxpose.xlu0.b32.cont [13/16] %v180_v12, 128 }
  0x77   : > { %197 = vxpose.xlu0.b32.cont [14/16] %v181_v13, 128 }
  0x7b   : > { %198 = vxpose.xlu0.b32.cont [15/16] %v182_v14, 128 }
  0x7f   : > { %199 = vxpose.xlu0.b32.end [16/16] %v183_v15, 128 }
  0xbf   : > { %v200_v16 = vpop.trf.xlu0 }
  0xc0   : > { %216 = vst [vmem:[%s842_s3] sm:$0xff] %v200_v16 }
  0xc3   : > { %v201_v17 = vpop.trf.xlu0 }
  0xc4   : > { %217 = vst [vmem:[%s842_s3 + $0x8] sm:$0xff] %v201_v17 }
  0xc7   : > { %v202_v18 = vpop.trf.xlu0 }
  0xc8   : > { %218 = vst [vmem:[%s842_s3 + $0x10] sm:$0xff] %v202_v18 }
  0xcb   : > { %v203_v19 = vpop.trf.xlu0 }
  0xcc   : > { %219 = vst [vmem:[%s842_s3 + $0x18] sm:$0xff] %v203_v19 }
  0xcf   : > { %v204_v20 = vpop.trf.xlu0 }
  0xd0   : > { %220 = vst [vmem:[%s842_s3 + $0x20] sm:$0xff] %v204_v20 }
  0xd3   : > { %v205_v21 = vpop.trf.xlu0 }
  0xd4   : > { %221 = vst [vmem:[%s842_s3 + $0x28] sm:$0xff] %v205_v21 }
  0xd7   : > { %v206_v22 = vpop.trf.xlu0 }
  0xd8   : > { %222 = vst [vmem:[%s842_s3 + $0x30] sm:$0xff] %v206_v22 }
  0xdb   : > { %v207_v23 = vpop.trf.xlu0 }
  0xdc   : > { %223 = vst [vmem:[%s842_s3 + $0x38] sm:$0xff] %v207_v23 }
  0xdf   : > { %v208_v24 = vpop.trf.xlu0 }
  0xe0   : > { %224 = vst [vmem:[%s842_s3 + $0x40] sm:$0xff] %v208_v24 }
  0xe3   : > { %v209_v25 = vpop.trf.xlu0 }
  0xe4   : > { %225 = vst [vmem:[%s842_s3 + $0x48] sm:$0xff] %v209_v25 }
  0xe7   : > { %v210_v26 = vpop.trf.xlu0 }
  0xe8   : > { %226 = vst [vmem:[%s842_s3 + $0x50] sm:$0xff] %v210_v26 }
  0xeb   : > { %v211_v27 = vpop.trf.xlu0 }
  0xec   : > { %227 = vst [vmem:[%s842_s3 + $0x58] sm:$0xff] %v211_v27 }
  0xef   : > { %v212_v28 = vpop.trf.xlu0 }
  0xf0   : > { %228 = vst [vmem:[%s842_s3 + $0x60] sm:$0xff] %v212_v28 }
  0xf3   : > { %v213_v29 = vpop.trf.xlu0 }
  0xf4   : > { %229 = vst [vmem:[%s842_s3 + $0x68] sm:$0xff] %v213_v29 }
  0xf7   : > { %v214_v30 = vpop.trf.xlu0 }
  0xf8   : > { %230 = vst [vmem:[%s842_s3 + $0x70] sm:$0xff] %v214_v30 }
  0xfb   : > { %v215_v31 = vpop.trf.xlu0 }
  0xfc   : > { %231 = vst [vmem:[%s842_s3 + $0x78] sm:$0xff] %v215_v31 }
  0xfd   : > { %534 = shalt.err (!%p531_p13)
}
  0xfe   : > { %s535_s9 = scalar_lea.hbm %s866_s27, 2048  ;;  %s539_s3 = scalar_lea.hbm %s964_s25, 16384 }
  0xff   : > { %p536_p0 = scmp.ne.s32.totalorder %s866_s27, %s535_s9  ;;  %p540_p3 = scmp.lt.s32.totalorder %s866_s27, %s964_s25 }
 0x100   : > { %p541_p6 = scmp.lt.s32.totalorder %s539_s3, %s535_s9 }
 0x101   : > { %p537_p1 = pnand %p536_p0, %p776_p11 }
 0x102   : > { %p542_p7 = por %p541_p6, %p540_p3 }
 0x103   : > { %p538_p5 = pneg %p537_p1 }
 0x105   : > { %p543_p4 = pnand %p542_p7, %p538_p5 }
 0x107   : > { %546 = shalt.err (!%p543_p4)
}
 0x108   : > { %s664_s20 = smov 128   ;;  %s665_s1 = smov 256  }
 0x109   : > { %s666_s6 = smov 8  }
 0x10a   : > { %371 = dma.vmem_to_hbm [thread:$0]  (%p776_p11), %s868_s2, 2048, %s866_s27, %s873_s12, %s664_s20, %s665_s1, %s666_s6  }
 0x10b PF: > { %s965_s26 = sld [smem:[#allocation8_spill]]  ;;  %p382_p8 = scmp.ge.s32.totalorder %s657_s18, 2 }
 0x10d   : > { %p378_p9 = pnand %p382_p8, %p784_p2 }
 0x10f   : > { %p379_p10 = pneg %p378_p9 }
 0x111   : > { %s265_s13 = sand.u32 1, %s965_s26  }
 0x112   : > { %s266_s14 = scalar_lea.sflag [#allocation4], %s265_s13 }
 0x113   : > { %604 = dma.done.wait (%p379_p10), %s266_s14, 2048  }
 0x114   : > { %606 = vsyncadd (%p379_p10), %s266_s14, 4294965248  ;;  %s17_s18 = sadd.s32 1, %s657_s18   ;;  %s968_s30 = sld [smem:[#allocation9_spill]] }
 0x115   : > { %p901_p12 = scmp.ge.s32.totalorder %s17_s18, 10   ;;  %s969_s2 = sld [smem:[#allocation10_spill]] }
 0x116   : > { %s970_s27 = sld [smem:[#allocation11_spill]]  ;;  %s971_s6 = smov %s613_s7 }
 0x117   : > { %s972_s7 = smov %s617_s8  ;;  %s973_s8 = smov %s794_s21 }
 0x118   : > { %s974_s9 = smov %s625_s10  ;;  %s975_s10 = smov %s629_s11 }
 0x119   : > { %s976_s11 = smov %s791_s22  ;;  %s977_s12 = smov %s645_s15 }
 0x11a   : > { %s978_s13 = smov %s649_s16  ;;  %s979_s14 = smov %s653_s17 }
 0x11b   : > { %s980_s15 = smov %s968_s30  ;;  %s981_s16 = smov %s969_s2 }
 0x11c   : > { %s982_s17 = smov %s970_s27  ;;  %16 = sbr.rel (!%p901_p12) target bundleno = 12 (0xc), region = 69 }
 0x121   :  { %271 = vsyncpa [#allocation3], 1 }
 0x122   :  { %273 = vsyncpa [#allocation3 + $0x1], 1 }
 0x123   :  { %274 = vsyncpa [#allocation4], 1 }
 0x124   :  { %276 = vsyncpa [#allocation4 + $0x1], 1 }

</bundles_post_ra>
